<compile_context>
chip_gen: v7x
topology: tpu7x:2x2x1
jax: 0.10.0
libtpu: 0.0.40
codegen_flags: <defaults>
</compile_context>

<pallas_src>
import functools

import jax
import jax.numpy as jnp
from jax import lax
from jax.experimental import pallas as pl
from jax.experimental.pallas import tpu as pltpu


def _vag_attention_kernel(hid_ref, ctx_ref, mask_ref, w_h2c_ref, w_c2c_ref,
                          alpha_ref, txt_ref, scores_scr, *, s_chunk, approx_recip):
    """One batch tile; the S axis is processed in chunks of `s_chunk` rows.

    hid_ref    : (TB, H)      image feature tile (compute dtype)
    ctx_ref    : (S, TB, C)   text states, native (S, B, C) layout (no HBM transpose)
    mask_ref   : (TB, S)      1.0 valid / 0.0 pad (batch-major block)
    w_h2c_ref  : (H, C)       hid2ctx weight, pre-transposed + pre-cast in wrapper
    w_c2c_ref  : (C, C)       ctx2ctx weight, pre-transposed + pre-cast in wrapper
    alpha_ref  : (TB, S)      attention weights output (lane-dense store)
    txt_ref    : (TB, C)      attended text context output
    scores_scr : (S, TB) f32  scratch: raw scores in pass 1, alpha for pass 2
    """
    S, TB, C = ctx_ref.shape
    n_chunks = S // s_chunk
    unroll = n_chunks <= 8
    compute_dtype = w_c2c_ref.dtype

    # hid_ = tanh(hid @ W_h2c.T): weight pre-transposed -> plain MXU dot, f32 acc.
    hid_t = jnp.tanh(
        jnp.dot(hid_ref[...], w_h2c_ref[...],
                preferred_element_type=jnp.float32))               # (TB, C) f32
    hid_b = hid_t.reshape(1, TB, C)                                # hoisted broadcast

    # ---- Pass 1: per-chunk ctx projection + dot-product scores --------------
    def score_chunk(c, carry):
        s0 = pl.multiple_of(c * s_chunk, s_chunk)
        ctx_chunk = ctx_ref[pl.ds(s0, s_chunk)]                    # (CS, TB, C)
        ctx2d = ctx_chunk.reshape(s_chunk * TB, C).astype(compute_dtype)
        ctx_t = jnp.tanh(
            jnp.dot(ctx2d, w_c2c_ref[...],
                    preferred_element_type=jnp.float32)
        ).reshape(s_chunk, TB, C)                                  # f32
        # scores[s, b] = <hid_[b], ctx_[s, b]>  (VPU multiply + lane reduce over C)
        scores_scr[pl.ds(s0, s_chunk), :] = jnp.sum(ctx_t * hid_b, axis=-1)
        return carry

    lax.fori_loop(0, n_chunks, score_chunk, 0, unroll=unroll)

    # ---- Mask + softmax over S (f32 regardless of compute dtype) ------------
    scores_st = scores_scr[...]                                    # (S, TB)
    mask_st = mask_ref[...].T                                      # (S, TB)  tiny
    scores_st = jnp.where(mask_st > 0, scores_st, jnp.float32(-100000000.0))
    m = jnp.max(scores_st, axis=0, keepdims=True)                  # (1, TB)
    e = jnp.exp(scores_st - m)
    denom = jnp.sum(e, axis=0, keepdims=True)
    if approx_recip:
        alpha_st = e * pl.reciprocal(denom, approx=True)           # EUP slot
    else:
        alpha_st = e / denom
    scores_scr[...] = alpha_st                                     # reuse scratch
    alpha_ref[...] = alpha_st.T                                    # lane-dense (TB, S)

    # ---- Pass 2: txt_ctx[b, c] = sum_s alpha[s, b] * ctx[s, b, c] ------------
    def txt_chunk(c, acc):
        s0 = pl.multiple_of(c * s_chunk, s_chunk)
        a = scores_scr[pl.ds(s0, s_chunk), :]                      # (CS, TB)
        ctx_chunk = ctx_ref[pl.ds(s0, s_chunk)].astype(jnp.float32)
        return acc + jnp.sum(a[:, :, None] * ctx_chunk, axis=0)    # (TB, C) f32

    txt = lax.fori_loop(0, n_chunks, txt_chunk,
                        jnp.zeros((TB, C), jnp.float32), unroll=unroll)
    txt_ref[...] = txt.astype(txt_ref.dtype)


def _vmem_limit_bytes():
    """Generation-aware VMEM limit: ~5/8 of physical per-core VMEM, capped at 96 MiB.
    (v5e/v6e: 128 MiB -> 80 MiB; v7x: 64 MiB/TC -> 40 MiB; unknown -> assume 64 MiB.)"""
    cap = 64 * 1024 * 1024
    try:
        cap = int(getattr(pltpu.get_tpu_info(), "vmem_capacity_bytes", cap))
    except Exception:
        pass
    return max(16 * 1024 * 1024, min((cap * 5) // 8, 96 * 1024 * 1024))


def _step_vmem_bytes(tb, s_chunk, S, C, H, ctx_bytes, cd_bytes):
    """Estimated VMEM footprint of one grid step: double-buffered blocks, resident
    weights, the scores scratch AND the in-kernel per-chunk intermediates."""
    ctx_db = 2 * S * tb * C * ctx_bytes                          # ctx block, 2 buffers
    small_db = 2 * tb * (H * cd_bytes + 4 * S) + 2 * tb * (S + C) * 4
    weights = 2 * (H * C + C * C) * cd_bytes                     # resident (worst case 2x)
    scratch = S * tb * 4                                         # scores/alpha scratch
    chunk = s_chunk * tb * C * (ctx_bytes + cd_bytes + 8)        # live chunk temporaries
    live = 4 * S * tb * 4 + 2 * tb * C * 4                       # softmax values, hid_t, acc
    return ctx_db + small_db + weights + scratch + chunk + live


def _choose_tiling(B, S, C, H, ctx_bytes, cd_bytes, budget):
    """Pick (batch_tile, s_chunk).

    Batch tiles are multiples of 8 dividing B; tiles giving >= 2 grid steps are
    preferred so dimension_semantics=("parallel",) can shard across both v7x TCs.
    S chunks are multiple-of-8 divisors of S (aligned sublane stores into the scores
    scratch); if none exist the kernel runs un-chunked and the batch tile shrinks.
    """
    mult8 = [d for d in range(8, B + 1, 8) if B % d == 0]
    tb_cands = sorted([d for d in mult8 if d <= B // 2], reverse=True)
    if not tb_cands:
        tb_cands = sorted(mult8, reverse=True) or [B]

    s_target = max(8, S // 8)
    s_cands = sorted([d for d in range(8, min(S, s_target) + 1, 8) if S % d == 0],
                     reverse=True) or [S]

    for tb in tb_cands:                      # biggest batch tile first (DMA contiguity)
        for sc in s_cands:                   # then biggest aligned chunk that fits
            if _step_vmem_bytes(tb, sc, S, C, H, ctx_bytes, cd_bytes) <= budget:
                return tb, sc
    return tb_cands[-1], s_cands[-1]         # best effort (may spill, still correct)


def visual_text_attention(hid, ctx, ctx_mask, w_h2c, w_c2c, *,
                          compute_dtype=jnp.float32, ctx_dtype=None,
                          approx_recip=False, batch_tile=None, s_chunk=None):
    """Pallas implementation of VisualTextAttention.forward.

    Args (PyTorch layouts):
      hid:      (1, B, hid_dim) float32
      ctx:      (S, B, ctx_dim) float32
      ctx_mask: (S, B) float32 (1 valid / 0 pad), or None
      w_h2c:    (ctx_dim, hid_dim)  -- hid2ctx Linear weight (torch (out, in))
      w_c2c:    (ctx_dim, ctx_dim)  -- ctx2ctx Linear weight

    compute_dtype: MXU operand dtype (f32 default; bf16 for speed).
    ctx_dtype:     optional dtype for the ctx HBM stream (bf16 halves DMA bytes).
    Softmax / tanh / accumulation always run in f32.

    Returns:
      alpha:   (S, B) float32
      txt_ctx: (B, ctx_dim) float32
    """
    S, B, C = ctx.shape
    H = hid.shape[-1]

    # One-time wrapper-side prep (small tensors only; no per-grid-step work).
    hid2d = jnp.squeeze(hid, axis=0).astype(compute_dtype)              # (B, H)
    if ctx_mask is None:
        mask_bs = jnp.ones((B, S), jnp.float32)
    else:
        mask_bs = jnp.transpose(ctx_mask, (1, 0)).astype(jnp.float32)   # (B, S) tiny
    w_h2c_t = jnp.transpose(w_h2c, (1, 0)).astype(compute_dtype)        # (H, C)
    w_c2c_t = jnp.transpose(w_c2c, (1, 0)).astype(compute_dtype)        # (C, C)
    ctx_in = ctx if ctx_dtype is None else ctx.astype(ctx_dtype)        # dominant stream

    ctx_bytes = jnp.dtype(ctx_in.dtype).itemsize
    cd_bytes = jnp.dtype(compute_dtype).itemsize

    vmem_limit = _vmem_limit_bytes()
    tb, sc = _choose_tiling(B, S, C, H, ctx_bytes, cd_bytes,
                            budget=(vmem_limit * 3) // 4)
    if batch_tile is not None:
        tb = batch_tile
    if s_chunk is not None:
        sc = s_chunk
    assert B % tb == 0, "batch tile must divide the batch size"
    assert S % sc == 0, "S chunk must divide the sequence length"
    grid = (B // tb,)

    kernel = functools.partial(_vag_attention_kernel, s_chunk=sc,
                               approx_recip=approx_recip)

    alpha_bs, txt_ctx = pl.pallas_call(
        kernel,
        grid=grid,
        in_specs=[
            pl.BlockSpec((tb, H), lambda i: (i, 0)),          # hid tile
            pl.BlockSpec((S, tb, C), lambda i: (0, i, 0)),    # ctx tile, native layout
            pl.BlockSpec((tb, S), lambda i: (i, 0)),          # mask tile
            pl.BlockSpec((H, C), lambda i: (0, 0)),           # resident weight
            pl.BlockSpec((C, C), lambda i: (0, 0)),           # resident weight
        ],
        out_specs=(
            pl.BlockSpec((tb, S), lambda i: (i, 0)),          # alpha (lane-dense)
            pl.BlockSpec((tb, C), lambda i: (i, 0)),          # txt_ctx
        ),
        out_shape=(
            jax.ShapeDtypeStruct((B, S), jnp.float32),
            jax.ShapeDtypeStruct((B, C), jnp.float32),
        ),
        scratch_shapes=[pltpu.VMEM((S, tb), jnp.float32)],    # scores/alpha scratch
        compiler_params=pltpu.CompilerParams(
            dimension_semantics=("parallel",),
            vmem_limit_bytes=vmem_limit,
        ),
    )(hid2d, ctx_in, mask_bs, w_h2c_t, w_c2c_t)

    # Back to the PyTorch (S, B) convention for alpha (tiny S*B transpose).
    return jnp.transpose(alpha_bs, (1, 0)), txt_ctx


def _reference(hid, ctx, ctx_mask, w_h2c, w_c2c):
    """Pure-JAX mirror of the PyTorch forward for validation."""
    ctx_ = jnp.tanh(jnp.einsum('sbc,dc->sbd', ctx, w_c2c))
    hid_ = jnp.tanh(jnp.einsum('tbh,dh->tbd', hid, w_h2c))
    scores = jnp.einsum('btd,bds->bts',
                        jnp.transpose(hid_, (1, 0, 2)),
                        jnp.transpose(ctx_, (1, 2, 0)))[:, 0, :].T   # (S, B)
    if ctx_mask is not None:
        scores = jnp.where(ctx_mask > 0, scores, -100000000.0)
    alpha = jax.nn.softmax(scores, axis=0)
    txt_ctx = jnp.sum(alpha[..., None] * ctx, axis=0)
    return alpha, txt_ctx


if __name__ == "__main__":
    # --- config 1: tiny shapes, exact f32 path -------------------------------
    B, S = 2, 8
    HID_DIM = 64    # feat_dim (image feature size)
    CTX_DIM = 32    # 2 * enc_dim (bidirectional text encoder)

    k1, k2, k3, k4 = jax.random.split(jax.random.PRNGKey(0), 4)
    hid = jax.random.normal(k1, (1, B, HID_DIM), dtype=jnp.float32)
    ctx = jax.random.normal(k2, (S, B, CTX_DIM), dtype=jnp.float32)
    ctx_mask = jnp.stack([jnp.ones((S,), jnp.float32),
                          (jnp.arange(S) < 5).astype(jnp.float32)], axis=1)   # (S, B)
    w_h2c = jax.random.normal(k3, (CTX_DIM, HID_DIM), jnp.float32) * jnp.sqrt(2.0 / HID_DIM)
    w_c2c = jax.random.normal(k4, (CTX_DIM, CTX_DIM), jnp.float32) * jnp.sqrt(2.0 / CTX_DIM)

    alpha, txt_ctx = visual_text_attention(hid, ctx, ctx_mask, w_h2c, w_c2c)
    jax.block_until_ready((alpha, txt_ctx))

    ref_alpha, ref_txt = _reference(hid, ctx, ctx_mask, w_h2c, w_c2c)
    assert alpha.shape == (S, B) and txt_ctx.shape == (B, CTX_DIM)
    assert jnp.allclose(alpha, ref_alpha, atol=1e-5, rtol=1e-5)
    assert jnp.allclose(txt_ctx, ref_txt, atol=1e-5, rtol=1e-5)

    # --- config 1, bf16 MXU + bf16 ctx stream + approx reciprocal (loose tol) -
    alpha_lp, txt_lp = visual_text_attention(
        hid, ctx, ctx_mask, w_h2c, w_c2c,
        compute_dtype=jnp.bfloat16, ctx_dtype=jnp.bfloat16, approx_recip=True)
    jax.block_until_ready((alpha_lp, txt_lp))
    assert float(jnp.max(jnp.abs(alpha_lp - ref_alpha))) < 0.1
    assert float(jnp.max(jnp.abs(txt_lp - ref_txt))) < 0.25

    # --- config 2: batch grid (TB=8, grid=2) + unrolled S-chunking (4 chunks) -
    B2, S2, HID2, CTX2 = 16, 32, 256, 128
    j1, j2, j3, j4, j5 = jax.random.split(jax.random.PRNGKey(1), 5)
    hid2 = jax.random.normal(j1, (1, B2, HID2), jnp.float32)
    ctx2 = jax.random.normal(j2, (S2, B2, CTX2), jnp.float32)
    lens = jax.random.randint(j5, (B2,), 4, S2 + 1)
    mask2 = (jnp.arange(S2)[:, None] < lens[None, :]).astype(jnp.float32)     # (S2, B2)
    w_h2c2 = jax.random.normal(j3, (CTX2, HID2), jnp.float32) * jnp.sqrt(2.0 / HID2)
    w_c2c2 = jax.random.normal(j4, (CTX2, CTX2), jnp.float32) * jnp.sqrt(2.0 / CTX2)

    alpha2, txt2 = visual_text_attention(hid2, ctx2, mask2, w_h2c2, w_c2c2)
    jax.block_until_ready((alpha2, txt2))
    ref_a2, ref_t2 = _reference(hid2, ctx2, mask2, w_h2c2, w_c2c2)
    assert alpha2.shape == (S2, B2) and txt2.shape == (B2, CTX2)
    assert jnp.allclose(alpha2, ref_a2, atol=1e-4, rtol=1e-4)
    assert jnp.allclose(txt2, ref_t2, atol=1e-4, rtol=1e-4)

    # --- config 3: non-unrolled chunk loop (16 chunks, dynamic pl.ds offsets) -
    B3, S3, HID3, CTX3 = 8, 128, 64, 128
    q1, q2, q3, q4, q5 = jax.random.split(jax.random.PRNGKey(2), 5)
    hid3 = jax.random.normal(q1, (1, B3, HID3), jnp.float32)
    ctx3 = jax.random.normal(q2, (S3, B3, CTX3), jnp.float32)
    lens3 = jax.random.randint(q5, (B3,), 1, S3 + 1)
    mask3 = (jnp.arange(S3)[:, None] < lens3[None, :]).astype(jnp.float32)    # (S3, B3)
    w_h2c3 = jax.random.normal(q3, (CTX3, HID3), jnp.float32) * jnp.sqrt(2.0 / HID3)
    w_c2c3 = jax.random.normal(q4, (CTX3, CTX3), jnp.float32) * jnp.sqrt(2.0 / CTX3)

    alpha3, txt3 = visual_text_attention(hid3, ctx3, mask3, w_h2c3, w_c2c3, s_chunk=8)
    jax.block_until_ready((alpha3, txt3))
    ref_a3, ref_t3 = _reference(hid3, ctx3, mask3, w_h2c3, w_c2c3)
    assert jnp.allclose(alpha3, ref_a3, atol=1e-4, rtol=1e-4)
    assert jnp.allclose(txt3, ref_t3, atol=1e-4, rtol=1e-4)

    print("KERNEL_OK")
</pallas_src>

<mosaic_0001>
module attributes {stable_mosaic.version = 11 : i64} {
  func.func @_vag_attention_kernel(%arg0: i32, %arg1: memref<2x64xf32, #tpu.memory_space<vmem>>, %arg2: memref<8x2x32xf32, #tpu.memory_space<vmem>>, %arg3: memref<2x8xf32, #tpu.memory_space<vmem>>, %arg4: memref<64x32xf32, #tpu.memory_space<vmem>>, %arg5: memref<32x32xf32, #tpu.memory_space<vmem>>, %arg6: memref<2x8xf32, #tpu.memory_space<vmem>>, %arg7: memref<2x32xf32, #tpu.memory_space<vmem>>, %arg8: memref<8x2xf32, #tpu.memory_space<vmem>>) attributes {dimension_semantics = [#tpu.dimension_semantics<parallel>], iteration_bounds = array<i64: 1>, scalar_prefetch = 0 : i64, scratch_operands = 1 : i64, tpu.core_type = #tpu.core_type<tc>, window_params = [{transform_indices = @transform_0, window_bounds = array<i64: 2, 64>}, {transform_indices = @transform_1, window_bounds = array<i64: 8, 2, 32>}, {transform_indices = @transform_2, window_bounds = array<i64: 2, 8>}, {pipeline_mode = #tpu.pipeline_mode<synchronous>, transform_indices = @transform_3, window_bounds = array<i64: 64, 32>}, {pipeline_mode = #tpu.pipeline_mode<synchronous>, transform_indices = @transform_4, window_bounds = array<i64: 32, 32>}, {transform_indices = @transform_5, window_bounds = array<i64: 2, 8>}, {transform_indices = @transform_6, window_bounds = array<i64: 2, 32>}]} {
    %c0 = arith.constant 0 : index
    %c0_0 = arith.constant 0 : index
    %0 = vector.load %arg1[%c0, %c0_0] : memref<2x64xf32, #tpu.memory_space<vmem>>, vector<2x64xf32>
    %c0_1 = arith.constant 0 : index
    %c0_2 = arith.constant 0 : index
    %1 = vector.load %arg4[%c0_1, %c0_2] : memref<64x32xf32, #tpu.memory_space<vmem>>, vector<64x32xf32>
    %cst = arith.constant dense<0.000000e+00> : vector<2x32xf32>
    %2 = tpu.matmul %0, %1, %cst {dimension_numbers = #tpu.dot_dimension_numbers<[1], [0], [0], [1], [0, 0, 1, 1], [], []>} : vector<2x64xf32>, vector<64x32xf32>, vector<2x32xf32> -> vector<2x32xf32>
    %3 = math.tanh %2 : vector<2x32xf32>
    %4 = vector.shape_cast %3 : vector<2x32xf32> to vector<1x2x32xf32>
    %c0_i32 = arith.constant 0 : i32
    %c8_i32 = arith.constant 8 : i32
    %5 = arith.muli %c0_i32, %c8_i32 : i32
    %6 = tpu.assume_multiple %5, 8 : i32
    %7 = arith.index_cast %6 : i32 to index
    %c0_3 = arith.constant 0 : index
    %c0_4 = arith.constant 0 : index
    %8 = vector.load %arg2[%7, %c0_3, %c0_4] : memref<8x2x32xf32, #tpu.memory_space<vmem>>, vector<8x2x32xf32>
    %9 = vector.shape_cast %8 : vector<8x2x32xf32> to vector<16x32xf32>
    %c0_5 = arith.constant 0 : index
    %c0_6 = arith.constant 0 : index
    %10 = vector.load %arg5[%c0_5, %c0_6] : memref<32x32xf32, #tpu.memory_space<vmem>>, vector<32x32xf32>
    %cst_7 = arith.constant dense<0.000000e+00> : vector<16x32xf32>
    %11 = tpu.matmul %9, %10, %cst_7 {dimension_numbers = #tpu.dot_dimension_numbers<[1], [0], [0], [1], [0, 0, 1, 1], [], []>} : vector<16x32xf32>, vector<32x32xf32>, vector<16x32xf32> -> vector<16x32xf32>
    %12 = math.tanh %11 : vector<16x32xf32>
    %13 = vector.shape_cast %12 : vector<16x32xf32> to vector<8x2x32xf32>
    %14 = vector.broadcast %4 : vector<1x2x32xf32> to vector<8x2x32xf32>
    %15 = arith.mulf %13, %14 : vector<8x2x32xf32>
    %cst_8 = arith.constant dense<0.000000e+00> : vector<8x2xf32>
    %16 = vector.multi_reduction <add>, %15, %cst_8 [2] : vector<8x2x32xf32> to vector<8x2xf32>
    %17 = arith.index_cast %6 : i32 to index
    %c0_9 = arith.constant 0 : index
    %18 = vector.load %arg8[%17, %c0_9] : memref<8x2xf32, #tpu.memory_space<vmem>>, vector<8x2xf32>
    tpu.vector_store %arg8[%17, %c0_9], %16 {strides = array<i32>} : memref<8x2xf32, #tpu.memory_space<vmem>>, vector<8x2xf32>,
    %c1_i32 = arith.constant 1 : i32
    %c0_10 = arith.constant 0 : index
    %c0_11 = arith.constant 0 : index
    %19 = vector.load %arg8[%c0_10, %c0_11] : memref<8x2xf32, #tpu.memory_space<vmem>>, vector<8x2xf32>
    %c0_12 = arith.constant 0 : index
    %c0_13 = arith.constant 0 : index
    %20 = vector.load %arg3[%c0_12, %c0_13] : memref<2x8xf32, #tpu.memory_space<vmem>>, vector<2x8xf32>
    %21 = tpu.transpose %20, [1, 0] : vector<2x8xf32> -> vector<8x2xf32>
    %cst_14 = arith.constant 0.000000e+00 : f32
    %22 = vector.broadcast %cst_14 : f32 to vector<8x2xf32>
    %23 = arith.cmpf ogt, %21, %22 : vector<8x2xf32>
    %cst_15 = arith.constant -1.000000e+08 : f32
    %24 = vector.broadcast %cst_15 : f32 to vector<8x2xf32>
    %25 = arith.select %23, %19, %24 : vector<8x2xi1>, vector<8x2xf32>
    %cst_16 = arith.constant dense<0xFF800000> : vector<2xf32>
    %26 = vector.multi_reduction <maximumf>, %25, %cst_16 [0] : vector<8x2xf32> to vector<2xf32>
    %27 = vector.shape_cast %26 : vector<2xf32> to vector<1x2xf32>
    %28 = vector.broadcast %27 : vector<1x2xf32> to vector<8x2xf32>
    %29 = arith.subf %25, %28 : vector<8x2xf32>
    %30 = math.exp %29 : vector<8x2xf32>
    %cst_17 = arith.constant dense<0.000000e+00> : vector<2xf32>
    %31 = vector.multi_reduction <add>, %30, %cst_17 [0] : vector<8x2xf32> to vector<2xf32>
    %32 = vector.shape_cast %31 : vector<2xf32> to vector<1x2xf32>
    %33 = vector.broadcast %32 : vector<1x2xf32> to vector<8x2xf32>
    %34 = arith.divf %30, %33 : vector<8x2xf32>
    %c0_18 = arith.constant 0 : index
    %c0_19 = arith.constant 0 : index
    %35 = vector.load %arg8[%c0_18, %c0_19] : memref<8x2xf32, #tpu.memory_space<vmem>>, vector<8x2xf32>
    tpu.vector_store %arg8[%c0_18, %c0_19], %34 {strides = array<i32>} : memref<8x2xf32, #tpu.memory_space<vmem>>, vector<8x2xf32>,
    %36 = tpu.transpose %34, [1, 0] : vector<8x2xf32> -> vector<2x8xf32>
    %c0_20 = arith.constant 0 : index
    %c0_21 = arith.constant 0 : index
    %37 = vector.load %arg6[%c0_20, %c0_21] : memref<2x8xf32, #tpu.memory_space<vmem>>, vector<2x8xf32>
    tpu.vector_store %arg6[%c0_20, %c0_21], %36 {strides = array<i32>} : memref<2x8xf32, #tpu.memory_space<vmem>>, vector<2x8xf32>,
    %cst_22 = arith.constant 0.000000e+00 : f32
    %38 = vector.broadcast %cst_22 : f32 to vector<2x32xf32>
    %c0_i32_23 = arith.constant 0 : i32
    %c8_i32_24 = arith.constant 8 : i32
    %39 = arith.muli %c0_i32_23, %c8_i32_24 : i32
    %40 = tpu.assume_multiple %39, 8 : i32
    %41 = arith.index_cast %40 : i32 to index
    %c0_25 = arith.constant 0 : index
    %42 = vector.load %arg8[%41, %c0_25] : memref<8x2xf32, #tpu.memory_space<vmem>>, vector<8x2xf32>
    %43 = arith.index_cast %40 : i32 to index
    %c0_26 = arith.constant 0 : index
    %c0_27 = arith.constant 0 : index
    %44 = vector.load %arg2[%43, %c0_26, %c0_27] : memref<8x2x32xf32, #tpu.memory_space<vmem>>, vector<8x2x32xf32>
    %45 = vector.shape_cast %42 : vector<8x2xf32> to vector<8x2x1xf32>
    %46 = vector.broadcast %45 : vector<8x2x1xf32> to vector<8x2x32xf32>
    %47 = arith.mulf %46, %44 : vector<8x2x32xf32>
    %cst_28 = arith.constant dense<0.000000e+00> : vector<2x32xf32>
    %48 = vector.multi_reduction <add>, %47, %cst_28 [0] : vector<8x2x32xf32> to vector<2x32xf32>
    %49 = arith.addf %38, %48 : vector<2x32xf32>
    %c1_i32_29 = arith.constant 1 : i32
    %c0_30 = arith.constant 0 : index
    %c0_31 = arith.constant 0 : index
    %50 = vector.load %arg7[%c0_30, %c0_31] : memref<2x32xf32, #tpu.memory_space<vmem>>, vector<2x32xf32>
    tpu.vector_store %arg7[%c0_30, %c0_31], %49 {strides = array<i32>} : memref<2x32xf32, #tpu.memory_space<vmem>>, vector<2x32xf32>,
    return
  }
  func.func @transform_0(%arg0: i32) -> (i32, i32) {
    %c0_i32 = arith.constant 0 : i32
    %c0_i32_0 = arith.constant 0 : i32
    return %arg0, %c0_i32 : i32, i32
  }
  func.func @transform_1(%arg0: i32) -> (i32, i32, i32) {
    %c0_i32 = arith.constant 0 : i32
    %c0_i32_0 = arith.constant 0 : i32
    %c0_i32_1 = arith.constant 0 : i32
    return %c0_i32, %arg0, %c0_i32_0 : i32, i32, i32
  }
  func.func @transform_2(%arg0: i32) -> (i32, i32) {
    %c0_i32 = arith.constant 0 : i32
    %c0_i32_0 = arith.constant 0 : i32
    return %arg0, %c0_i32 : i32, i32
  }
  func.func @transform_3(%arg0: i32) -> (i32, i32) {
    %c0_i32 = arith.constant 0 : i32
    %c0_i32_0 = arith.constant 0 : i32
    %c0_i32_1 = arith.constant 0 : i32
    return %c0_i32, %c0_i32_0 : i32, i32
  }
  func.func @transform_4(%arg0: i32) -> (i32, i32) {
    %c0_i32 = arith.constant 0 : i32
    %c0_i32_0 = arith.constant 0 : i32
    %c0_i32_1 = arith.constant 0 : i32
    return %c0_i32, %c0_i32_0 : i32, i32
  }
  func.func @transform_5(%arg0: i32) -> (i32, i32) {
    %c0_i32 = arith.constant 0 : i32
    %c0_i32_0 = arith.constant 0 : i32
    return %arg0, %c0_i32 : i32, i32
  }
  func.func @transform_6(%arg0: i32) -> (i32, i32) {
    %c0_i32 = arith.constant 0 : i32
    %c0_i32_0 = arith.constant 0 : i32
    return %arg0, %c0_i32 : i32, i32
  }
}

</mosaic_0001>

<bundles_post_ra>
// kernel: tpu_custom_call.1
= control target key start
LH: loop header
LB: loop body
LE: loop exit
PB: predicated region body
PF: predicated region fallthrough
CT: control target
= control target key end

     0   :  { %12 = vsyncpa [#allocation4], 0  ;;  %v135_v3 = vlaneseq  ;;  %v722_v4 = vmov 0.0|0.0   ;;  %v723_v9 = vmov 1983009808   ;;  %vm724_vm0 = vmmov 0   ;;  %s912_s0 = inlined_call_operand.vmem [shape: f32[2,64], index: 0, kind: input, shape index: {}]   ;;  %s913_s1 = inlined_call_operand.vmem [shape: f32[8,2,32], index: 1, kind: input, shape index: {}]   ;;  %s914_s2 = inlined_call_operand.vmem [shape: f32[2,8], index: 2, kind: input, shape index: {}]   ;;  %s915_s3 = inlined_call_operand.vmem [shape: f32[64,32], index: 3, kind: input, shape index: {}]   ;;  %s916_s4 = inlined_call_operand.vmem [shape: f32[32,32], index: 4, kind: input, shape index: {}]   ;;  %s917_s5 = inlined_call_operand.hbm [shape: f32[2,8], index: 5, kind: output, shape index: {0}]   ;;  %s918_s6 = inlined_call_operand.hbm [shape: f32[2,32], index: 6, kind: output, shape index: {1}]  }
   0x1   :  { %v25_v0 = vld [vmem:[%s915_s3] sm:$0xff]  ;;  %v26_v1 = vld [vmem:[%s915_s3 + $0x8] sm:$0xff]  ;;  %638 = vmatprep.subr.bf16.mxu0 %v722_v4  ;;  %v27_v7 = vld [vmem:[%s915_s3 + $0x10] sm:$0xff]  ;;  %v133_v10 = vunpack.c.l.s4 %v723_v9  ;;  %v725_v22 = vmov 0.0  }
   0x2   :  { %v118_v2 = vld [vmem:[%s916_s4] sm:$0xff]  ;;  %v639_v5 = vpack.c.bf16 %v26_v1, %v25_v0  ;;  %v119_v6 = vld [vmem:[%s916_s4 + $0x8] sm:$0xff]  ;;  %v28_v8 = vld [vmem:[%s915_s3 + $0x18] sm:$0xff]  ;;  %v791_v15 = vshrl.u32 %v135_v3, 7  ;;  %624 = vmatprep.mubr.msk.f32.mxu0 %vm724_vm0, %v725_v22 }
   0x3   :  { %v650_v11 = vpack.c.bf16 %v119_v6, %v118_v2  ;;  %v120_v12 = vld [vmem:[%s916_s4 + $0x10] sm:$0xff]  ;;  %v121_v13 = vld [vmem:[%s916_s4 + $0x18] sm:$0xff]  ;;  %v29_v14 = vld [vmem:[%s915_s3 + $0x20] sm:$0xff]  ;;  %v642_v16 = vpack.c.bf16 %v28_v8, %v27_v7  ;;  %v134_v21 = vunpack.c.0.s8 %v133_v10 }
   0x4   :  { %640 = vmatpush3.bf16.msra.mxu0 %v639_v5  ;;  %v654_v17 = vpack.c.bf16 %v121_v13, %v120_v12  ;;  %v30_v18 = vld [vmem:[%s915_s3 + $0x28] sm:$0xff]  ;;  %v110_v19 = vld [vmem:[%s913_s1] sm:$0x3]  ;;  %v111_v20 = vld [vmem:[%s913_s1 + $0x2] sm:$0x3] }
   0x5   :  { %651 = vmatprep.subr.bf16.mxu1 %v650_v11  ;;  %641 = vmatprep.subr.bf16.mxu0 %v722_v4  ;;  %v112_v23 = vld [vmem:[%s913_s1 + $0x4] sm:$0x3]  ;;  %v113_v24 = vld [vmem:[%s913_s1 + $0x6] sm:$0x3]  ;;  %v130_v25 = vcombine.low %v110_v19, %v111_v20  ;;  %v114_v26 = vld [vmem:[%s913_s1 + $0x8] sm:$0x3]  ;;  %v137_v28 = vsub.s32 %v134_v21, %v791_v15  ;;  %v645_v34 = vpack.c.bf16 %v30_v18, %v29_v14 }
   0x6   :  { %653 = vmatpush3.bf16.msra.mxu1 %v650_v11  ;;  %v131_v27 = vcombine.low %v112_v23, %v113_v24  ;;  %v115_v29 = vld [vmem:[%s913_s1 + $0xa] sm:$0x3]  ;;  %v116_v30 = vld [vmem:[%s913_s1 + $0xc] sm:$0x3]  ;;  %v117_v31 = vld [vmem:[%s913_s1 + $0xe] sm:$0x3] }
   0x7   :  { %655 = vmatprep.subr.bf16.mxu1 %v654_v17  ;;  %v147_v32 = vcombine.low %v114_v26, %v115_v29  ;;  %v148_v33 = vcombine.low %v116_v30, %v117_v31  ;;  %v138_v35 = vrot.slane %v130_v25, %v137_v28 }
   0x8   :  { %643 = vmatpush3.bf16.msra.mxu0 %v642_v16  ;;  %v145_v36 = vrot.slane %v131_v27, %v137_v28 }
   0x9   :  { %13 = vsyncpa [#allocation6], 0  ;;  %644 = vmatprep.subr.bf16.mxu0 %v722_v4  ;;  %vm164_vm1 = vcmask 261120   ;;  %v155_v37 = vrot.slane %v147_v32, %v137_v28  ;;  %v162_v38 = vrot.slane %v148_v33, %v137_v28  ;;  %v31_v39 = vld [vmem:[%s915_s3 + $0x30] sm:$0xff]  ;;  %v32_v40 = vld [vmem:[%s915_s3 + $0x38] sm:$0xff]  ;;  %vm33_vm2 = vcmask 523264  }
   0xa   :  { %657 = vmatpush3.bf16.msra.mxu1 %v654_v17  ;;  %v146_v41 = vcombine.low %v138_v35, %v145_v36  ;;  %v648_v43 = vpack.c.bf16 %v32_v40, %v31_v39  ;;  %v24_v44 = vld [vmem:[%s912_s0] sm:$0x3]  ;;  %vm298_vm3 = vcmask 254976   ;;  %v332_v17 = vand.u32 127, %v135_v3 }
   0xb   :  { %v163_v42 = vcombine.low %v155_v37, %v162_v38  ;;  %v383_v16 = vld [vmem:[%s914_s2] sm:$0x3]  ;;  %vm365_vm4 = vcmask 1041409   ;;  %vm367_vm5 = vcmask 1042434   ;;  %vm369_vm6 = vcmask 1043459   ;;  %s726_s2 = smov [#allocation3]  }
   0xc   :  { %646 = vmatpush3.bf16.msra.mxu0 %v645_v34  ;;  %635 = vmatprep.mubr.msk.f32.mxu1 %vm164_vm1, %v146_v41  ;;  %v335_v20 = vsub.s32 %v332_v17, %v791_v15  ;;  %vm371_vm7 = vcmask 1044484   ;;  %vm373_vm8 = vcmask 1045509   ;;  %vm375_vm9 = vcmask 1046534   ;;  %s568_s14 = sshll.u32 %s726_s2, 4  ;;  %s569_s14 = int_to_ptr.vmem [resolvable:$true] %s568_s14 }
   0xd   :  { %636 = vmatmul.mubr.msk.f32.vlgmr.msra.gmra.mrb[0].mxu1 %vm164_vm1, %v163_v42  ;;  %647 = vmatprep.subr.bf16.mxu0 %v722_v4  ;;  %vm377_vm10 = vcmask 1047559   ;;  %vm380_vm11 = vcmask 15360   ;;  %vm470_vm13 = vcmask 58368   ;;  %s674_s15 = scalar_lea.vmem %s569_s14, 32  ;;  %p679_p1 = scmp.lt.s32.totalorder %s569_s14, %s569_s14 }
   0xe   :  { %p675_p0 = scmp.ne.s32.totalorder %s569_s14, %s674_s15  ;;  %p680_p2 = scmp.lt.s32.totalorder %s674_s15, %s674_s15 }
  0x10   :  { %649 = vmatpush3.bf16.msra.mxu0 %v648_v43  ;;  %p681_p3 = por %p680_p2, %p679_p1 }
  0x12   :  { %p682_p4 = pnand %p681_p3, %p675_p0 }
  0x13   :  { %625 = vmatmul.mubr.msk.f32.vlgmr.msra.gmra.mrb[0].mxu0 %vm33_vm2, %v24_v44 }
  0xe0   :  { %v637_v45 = vpop.f32.mrb[0].mxu1 }
  0xe1   :  { %664 = vtanh.f32 %v637_v45  ;;  %v235_v46 = vpop.f32.mrb[1].mxu1 }
  0xe2   :  { %666 = vtanh.f32 %v235_v46 }
  0xe6   :  { %v103_v47 = vpop.f32.mrb[0].mxu0 }
  0xe7   :  { %668 = vtanh.f32 %v103_v47  ;;  %v626_v48 = vpop.f32.mrb[1].mxu0 }
  0xeb   :  { %v665_v49 = vpop.eup %664 }
  0xec   :  { %v667_v50 = vpop.eup %666  ;;  %v272_v51 = vrot.slane %v665_v49, %v137_v28  ;;  %v265_v52 = vcombine.high %v665_v49, %v665_v49 }
  0xed   :  { %v248_v53 = vcombine.high %v667_v50, %v667_v50  ;;  %v255_v54 = vrot.slane %v667_v50, %v137_v28 }
  0xee   :  { %v280_v55 = vcombine.high %v272_v51, %v272_v51  ;;  %v279_v56 = vrot.slane %v265_v52, %v137_v28 }
  0xef   :  { %v262_v57 = vrot.slane %v248_v53, %v137_v28  ;;  %v263_v58 = vcombine.high %v255_v54, %v255_v54 }
  0xf0   :  { %v281_v59 = vcombine.high %v279_v56, %v279_v56 }
  0xf1   :  { %v669_v60 = vpop.eup %668  ;;  %v264_v61 = vcombine.high %v262_v57, %v262_v57 }
  0xf2   :  { %v292_v62 = vmul.f32 %v669_v60, %v262_v57  ;;  %v290_v63 = vmul.f32 %v669_v60, %v255_v54  ;;  %v295_v0 = vmul.f32 %v669_v60, %v280_v55  ;;  %v291_v1 = vmul.f32 %v669_v60, %v263_v58 }
  0xf3   :  { %v293_v2 = vmul.f32 %v669_v60, %v264_v61  ;;  %v294_v4 = vmul.f32 %v669_v60, %v272_v51  ;;  %v297_v5 = vmul.f32 %v669_v60, %v281_v59  ;;  %v296_v6 = vmul.f32 %v669_v60, %v279_v56 }
  0xf4   :  { %v305_v7 = vsel %vm298_vm3, %v292_v62, 0.0  ;;  %v299_v8 = vsel %vm298_vm3, %v290_v63, 0.0  ;;  %v314_v9 = vsel %vm298_vm3, %v295_v0, 0.0  ;;  %v302_v10 = vsel %vm298_vm3, %v291_v1, 0.0 }
  0xf5   :  { %306 = vadd.xlane.f32.xlu1 %v305_v7  ;;  %300 = vadd.xlane.f32.xlu0 %v299_v8  ;;  %v308_v11 = vsel %vm298_vm3, %v293_v2, 0.0  ;;  %v311_v12 = vsel %vm298_vm3, %v294_v4, 0.0  ;;  %v320_v13 = vsel %vm298_vm3, %v297_v5, 0.0  ;;  %v317_v14 = vsel %vm298_vm3, %v296_v6, 0.0 }
  0xf6   :  { %v483_v63 = vsub.s32 0, %v791_v15  ;;  %v490_v2 = vsub.s32 1, %v791_v15  ;;  %v497_v5 = vsub.s32 2, %v791_v15  ;;  %v504_v7 = vsub.s32 3, %v791_v15 }
  0xf9   :  { %315 = vadd.xlane.f32.xlu1 %v314_v9  ;;  %303 = vadd.xlane.f32.xlu0 %v302_v10  ;;  %v511_v9 = vsub.s32 4, %v791_v15 }
  0xfd   :  { %309 = vadd.xlane.f32.xlu1 %v308_v11  ;;  %312 = vadd.xlane.f32.xlu0 %v311_v12  ;;  %v518_v11 = vsub.s32 5, %v791_v15 }
 0x101   :  { %321 = vadd.xlane.f32.xlu1 %v320_v13  ;;  %318 = vadd.xlane.f32.xlu0 %v317_v14  ;;  %v525_v13 = vsub.s32 6, %v791_v15 }
 0x12e   :  { %384 = vxpose.xlu0.b32.start.end [1/1] (short) (narrow) %v383_v16, 8  ;;  %v532_v16 = vsub.s32 7, %v791_v15 }
 0x182   :  { %v307_v18 = vpop.xlane.xlu1 %306  ;;  %v301_v19 = vpop.xlane.xlu0 %300 }
 0x183   :  { %v336_v23 = vrot.slane %v301_v19, %v335_v20  ;;  %v344_v26 = vrot.slane %v307_v18, %v335_v20 }
 0x186   :  { %v316_v21 = vpop.xlane.xlu1 %315  ;;  %v304_v22 = vpop.xlane.xlu0 %303 }
 0x187   :  { %v340_v24 = vrot.slane %v304_v22, %v335_v20  ;;  %v356_v3 = vrot.slane %v316_v21, %v335_v20 }
 0x189   :  { %v366_v25 = vsel %vm365_vm4, %v340_v24, %v336_v23 }
 0x18a   :  { %v310_v27 = vpop.xlane.xlu1 %309  ;;  %v313_v28 = vpop.xlane.xlu0 %312  ;;  %v368_v31 = vsel %vm367_vm5, %v344_v26, %v366_v25 }
 0x18b   :  { %v348_v29 = vrot.slane %v310_v27, %v335_v20  ;;  %v352_v30 = vrot.slane %v313_v28, %v335_v20 }
 0x18d   :  { %v370_v32 = vsel %vm369_vm6, %v348_v29, %v368_v31 }
 0x18e   :  { %v372_v33 = vsel %vm371_vm7, %v352_v30, %v370_v32  ;;  %v322_v34 = vpop.xlane.xlu1 %321  ;;  %v319_v35 = vpop.xlane.xlu0 %318 }
 0x18f   :  { %v364_v36 = vrot.slane %v322_v34, %v335_v20  ;;  %v374_v37 = vsel %vm373_vm8, %v356_v3, %v372_v33  ;;  %v360_v38 = vrot.slane %v319_v35, %v335_v20 }
 0x191   :  { %v376_v39 = vsel %vm375_vm9, %v360_v38, %v374_v37 }
 0x192   :  { %v378_v40 = vsel %vm377_vm10, %v364_v36, %v376_v39 }
 0x193   :  { %381 = vst.msk [vmem:[#allocation2] sm:$0xff] %vm380_vm11, %v378_v40 }
 0x19a   :  { %v382_v42 = vld [vmem:[#allocation2] sm:$0xff] }
 0x1ae   :  { %v400_v41 = vpop.trf.xlu0 }
 0x1af   :  { %vm416_vm12 = vcmp.gt.f32.partialorder %v400_v41, 0.0 }
 0x1b0   :  { %v417_v43 = vsel %vm416_vm12, %v382_v42, -1e+08 }
 0x1b1   :  { %v418_v44 = vsel %vm380_vm11, %v417_v43, -inf }
 0x1b2   :  { %v419_v45 = vrot.slane %v418_v44, 4 }
 0x1b4   :  { %v420_v46 = vmax.f32 %v418_v44, %v419_v45 }
 0x1b6   :  { %v421_v47 = vrot.slane %v420_v46, 2 }
 0x1b8   :  { %v422_v48 = vmax.f32 %v420_v46, %v421_v47 }
 0x1ba   :  { %v423_v49 = vrot.slane %v422_v48, 1 }
 0x1bc   :  { %v424_v50 = vmax.f32 %v422_v48, %v423_v49 }
 0x1be   :  { %v425_v51 = vsub.f32 %v417_v43, %v424_v50 }
 0x1c0   :  { %v426_v52 = vmul.f32 1.442695, %v425_v51 }
 0x1c2   :  { %670 = vpow2.f32 %v426_v52 }
 0x1cc   :  { %v671_v53 = vpop.eup %670 }
 0x1cd   :  { %v428_v54 = vsel %vm380_vm11, %v671_v53, 0.0 }
 0x1ce   :  { %v429_v55 = vrot.slane %v428_v54, 4 }
 0x1d0   :  { %v430_v56 = vadd.f32 %v429_v55, %v428_v54 }
 0x1d2   :  { %v431_v57 = vrot.slane %v430_v56, 2 }
 0x1d4   :  { %v432_v58 = vadd.f32 %v431_v57, %v430_v56 }
 0x1d6   :  { %v433_v59 = vrot.slane %v432_v58, 1 }
 0x1d8   :  { %v434_v60 = vadd.f32 %v433_v59, %v432_v58 }
 0x1da   :  { %672 = vrcp.f32 %v434_v60 }
 0x1e4   :  { %v673_v61 = vpop.eup %672 }
 0x1e5   :  { %v436_v62 = vmul.f32 %v673_v61, %v671_v53 }
 0x1e7   :  { %438 = vxpose.xlu0.b32.start.end [1/1] (short) (narrow) %v436_v62, 8  ;;  %437 = vst.msk [vmem:[#allocation2] sm:$0xff] %vm380_vm11, %v436_v62 }
 0x1ee   :  { %v472_v0 = vld [vmem:[#allocation2] sm:$0xff] }
 0x1ef   :  { %v484_v1 = vrot.slane %v472_v0, %v483_v63  ;;  %v491_v4 = vrot.slane %v472_v0, %v490_v2  ;;  %v498_v6 = vrot.slane %v472_v0, %v497_v5  ;;  %v505_v8 = vrot.slane %v472_v0, %v504_v7 }
 0x1f0   :  { %v512_v10 = vrot.slane %v472_v0, %v511_v9  ;;  %v519_v12 = vrot.slane %v472_v0, %v518_v11  ;;  %v526_v14 = vrot.slane %v472_v0, %v525_v13  ;;  %v533_v17 = vrot.slane %v472_v0, %v532_v16 }
 0x1f1   :  { %486 = vbcast.lane.b32.xlu1 %v484_v1, 256 }
 0x1f5   :  { %493 = vbcast.lane.b32.xlu1 %v491_v4, 256 }
 0x1f9   :  { %500 = vbcast.lane.b32.xlu1 %v498_v6, 256 }
 0x1fd   :  { %507 = vbcast.lane.b32.xlu1 %v505_v8, 256 }
 0x201   :  { %514 = vbcast.lane.b32.xlu1 %v512_v10, 256 }
 0x205   :  { %521 = vbcast.lane.b32.xlu1 %v519_v12, 256 }
 0x209   :  { %528 = vbcast.lane.b32.xlu1 %v526_v14, 256 }
 0x20d   :  { %535 = vbcast.lane.b32.xlu1 %v533_v17, 256 }
 0x263   :  { %v487_v18 = vpop.permute.xlu1 %486 }
 0x267   :  { %v494_v19 = vpop.permute.xlu1 %493  ;;  %v454_v20 = vpop.trf.xlu0 }
 0x268   :  { %471 = vst.msk [vmem:[#allocation3] sm:$0x3] %vm470_vm13, %v454_v20 }
 0x269   :  { %685 = shalt.err (!%p682_p4)
}
 0x26a   :  { %s686_s18 = scalar_lea.hbm %s917_s5, 32 }
 0x26b   :  { %p687_p5 = scmp.ne.s32.totalorder %s917_s5, %s686_s18  ;;  %p690_p6 = scmp.lt.u32.totalorder %s686_s18, %s917_s5 }
 0x26d   :  { %p692_p7 = pnand %p690_p6, %p687_p5 }
 0x26f   :  { %695 = shalt.err (!%p692_p7)
}
 0x270   :  { %571 = dma.vmem_to_hbm [thread:$0]  %s569_s14, 32, %s917_s5, [#allocation4]   ;;  %v501_v15 = vpop.permute.xlu1 %500  ;;  %v474_v21 = vld [vmem:[%s913_s1 + $0x2] sm:$0x3]  ;;  %v473_v22 = vld [vmem:[%s913_s1] sm:$0x3] }
 0x271   :  { %v475_v23 = vld [vmem:[%s913_s1 + $0x4] sm:$0x3]  ;;  %v538_v25 = vmul.f32 %v494_v19, %v474_v21  ;;  %v476_v26 = vld [vmem:[%s913_s1 + $0x6] sm:$0x3]  ;;  %v537_v27 = vmul.f32 %v487_v18, %v473_v22  ;;  %v477_v29 = vld [vmem:[%s913_s1 + $0x8] sm:$0x3] }
 0x272   :  { %v539_v28 = vmul.f32 %v501_v15, %v475_v23  ;;  %v478_v32 = vld [vmem:[%s913_s1 + $0xa] sm:$0x3]  ;;  %v479_v41 = vld [vmem:[%s913_s1 + $0xc] sm:$0x3]  ;;  %v480_v48 = vld [vmem:[%s913_s1 + $0xe] sm:$0x3] }
 0x273   :  { %v546_v31 = vsel %vm298_vm3, %v538_v25, 0.0  ;;  %v545_v33 = vsel %vm298_vm3, %v537_v27, 0.0  ;;  %s727_s3 = smov [#allocation5]  }
 0x274   :  { %v508_v24 = vpop.permute.xlu1 %507  ;;  %v548_v34 = vsel %vm298_vm3, %v539_v28, 0.0  ;;  %v547_v36 = vadd.f32 %v546_v31, %v545_v33  ;;  %s578_s2 = sshll.u32 %s727_s3, 4  ;;  %s579_s2 = int_to_ptr.vmem [resolvable:$true] %s578_s2 }
 0x275   :  { %v540_v3 = vmul.f32 %v508_v24, %v476_v26  ;;  %s696_s14 = scalar_lea.vmem %s579_s2, 32  ;;  %p701_p9 = scmp.lt.s32.totalorder %s579_s2, %s579_s2 }
 0x276   :  { %v549_v40 = vadd.f32 %v548_v34, %v547_v36  ;;  %p697_p8 = scmp.ne.s32.totalorder %s579_s2, %s696_s14  ;;  %p702_p10 = scmp.lt.s32.totalorder %s696_s14, %s696_s14 }
 0x277   :  { %v550_v38 = vsel %vm298_vm3, %v540_v3, 0.0 }
 0x278   :  { %v515_v30 = vpop.permute.xlu1 %514  ;;  %v551_v43 = vadd.f32 %v550_v38, %v549_v40  ;;  %p703_p11 = por %p702_p10, %p701_p9 }
 0x279   :  { %v541_v35 = vmul.f32 %v515_v30, %v477_v29 }
 0x27a   :  { %p704_p12 = pnand %p703_p11, %p697_p8 }
 0x27b   :  { %v552_v42 = vsel %vm298_vm3, %v541_v35, 0.0 }
 0x27c   :  { %v522_v37 = vpop.permute.xlu1 %521  ;;  %v553_v47 = vadd.f32 %v552_v42, %v551_v43 }
 0x27d   :  { %v542_v39 = vmul.f32 %v522_v37, %v478_v32 }
 0x27f   :  { %v554_v45 = vsel %vm298_vm3, %v542_v39, 0.0 }
 0x280   :  { %v529_v44 = vpop.permute.xlu1 %528  ;;  %v555_v50 = vadd.f32 %v554_v45, %v553_v47 }
 0x281   :  { %v543_v46 = vmul.f32 %v529_v44, %v479_v41 }
 0x283   :  { %v556_v49 = vsel %vm298_vm3, %v543_v46, 0.0 }
 0x284   :  { %v536_v51 = vpop.permute.xlu1 %535  ;;  %v557_v53 = vadd.f32 %v556_v49, %v555_v50 }
 0x285   :  { %v544_v52 = vmul.f32 %v536_v51, %v480_v48 }
 0x287   :  { %v558_v54 = vsel %vm298_vm3, %v544_v52, 0.0 }
 0x288   :  { %v559_v55 = vadd.f32 %v558_v54, %v557_v53 }
 0x28a   :  { %561 = vst.msk [vmem:[#allocation5] sm:$0x3] %vm298_vm3, %v559_v55 }
 0x28b   :  { %707 = shalt.err (!%p704_p12)
}
 0x28c   :  { %s708_s16 = scalar_lea.hbm %s918_s6, 32 }
 0x28d   :  { %p709_p13 = scmp.ne.s32.totalorder %s918_s6, %s708_s16  ;;  %p712_p0 = scmp.lt.u32.totalorder %s708_s16, %s918_s6 }
 0x28f   :  { %p714_p1 = pnand %p712_p0, %p709_p13 }
 0x291   :  { %717 = shalt.err (!%p714_p1)
}
 0x292   :  { %581 = dma.vmem_to_hbm [thread:$0]  %s579_s2, 32, %s918_s6, [#allocation6]  }
 0x293   :  { %718 = dma.done.wait [#allocation4], 32  }
 0x294   :  { %719 = vsyncadd [#allocation4], 4294967264 }
 0x295   :  { %720 = dma.done.wait [#allocation6], 32  }
 0x296   :  { %721 = vsyncadd [#allocation6], 4294967264 }
 0x297   :  { %588 = vsyncpa [#allocation4], 1 }
 0x298   :  { %589 = vsyncpa [#allocation6], 1 }

</bundles_post_ra>
